<compile_context>
chip_gen: v5e
topology: v5e:2x2
jax: 0.10.0
libtpu: 0.0.40
codegen_flags: <defaults>
</compile_context>

<pallas_src>
import math

import numpy as np
import jax
import jax.numpy as jnp
from jax.experimental import pallas as pl
from jax.experimental.pallas import tpu as pltpu


# ----------------------------------------------------------------------------
# Constant construction (numpy, compile time)
# ----------------------------------------------------------------------------
def _gaussian_1d(kernel_size: int, sigma: float) -> np.ndarray:
    """Per-dimension factor of the PyTorch __init__ math, normalized.

    PyTorch builds outer(g, g) / sum(outer(g, g)) == outer(g/sum(g), g/sum(g)),
    so normalizing the 1D factor and applying it twice is exactly equivalent.
    """
    x = np.arange(kernel_size, dtype=np.float64)
    mean = (kernel_size - 1) / 2.0
    g = (1.0 / (sigma * math.sqrt(2.0 * math.pi))) * np.exp(
        -(((x - mean) / (2.0 * sigma)) ** 2)
    )
    return g / g.sum()


def _reflect_index(idx: int, n: int) -> int:
    """PyTorch/numpy 'reflect' (no edge repeat); valid while |overhang| <= n-1."""
    if idx < 0:
        idx = -idx
    if idx > n - 1:
        idx = 2 * (n - 1) - idx
    return idx


def _blur_matrices(H: int, W: int, kernel_size: int, sigma: float):
    """Banded matrices with reflect padding folded in: blur == A_h @ x @ A_w."""
    g = _gaussian_1d(kernel_size, sigma)
    pad = (kernel_size - 1) // 2
    a_h = np.zeros((H, H), np.float64)
    for h in range(H):
        for i in range(kernel_size):
            a_h[h, _reflect_index(h - pad + i, H)] += g[i]
    a_w = np.zeros((W, W), np.float64)
    for w in range(W):
        for j in range(kernel_size):
            a_w[_reflect_index(w - pad + j, W), w] += g[j]
    return a_h.astype(np.float32), a_w.astype(np.float32)


# ----------------------------------------------------------------------------
# Kernel body: one (R, Wp) slab per grid step, two big bf16 MXU matmuls
# ----------------------------------------------------------------------------
def _blur_kernel(a_h_ref, a_w_ref, x_ref, o_ref):
    xb = x_ref[...].astype(jnp.bfloat16)                         # (R, Wp) bf16
    t = jnp.dot(xb, a_w_ref[...],
                preferred_element_type=jnp.float32)              # W-pass (+reflect)
    y = jnp.dot(a_h_ref[...], t.astype(jnp.bfloat16),
                preferred_element_type=jnp.float32)              # H-pass (+reflect)
    o_ref[...] = y.astype(o_ref.dtype)


# ----------------------------------------------------------------------------
# Wrapper
# ----------------------------------------------------------------------------
def _vmem_capacity_bytes() -> int:
    try:
        return int(pltpu.get_tpu_info().vmem_capacity_bytes)
    except Exception:
        return 64 << 20  # conservative fallback (v7x has the smallest VMEM)


def gaussian_smoothing(x, channels: int, kernel_size: int, sigma: float):
    """x: (B, C, H, W) -> (B, C, H, W); same semantics as GaussianSmoothing.forward."""
    B, C, H, W = x.shape
    assert C == channels
    pad = (kernel_size - 1) // 2
    assert pad <= H - 1 and pad <= W - 1, "kernel too large for reflect padding"

    a_h_np, a_w_np = _blur_matrices(H, W, kernel_size, sigma)
    itemsize = x.dtype.itemsize
    vmem_cap = _vmem_capacity_bytes()

    # ---- lane packing: make the last (lane) axis >= 128 wide ----------------
    p = pl.cdiv(128, W) if W < 128 else 1       # planes packed along lanes
    Wp = p * W

    # ---- sublane stacking: packed planes per grid step ----------------------
    bc = B * C
    g = pl.cdiv(bc, p)                          # number of packed planes
    # aim for a 256-512 row matmul slab; bound the block-diagonal H-pass waste
    nbc = max(1, min(g, 512 // max(H, 1)))
    m = 8 // math.gcd(H, 8)                     # keep (nbc * H) % 8 == 0
    nbc = max(m, (nbc // m) * m)

    a_w_bytes = Wp * Wp * 2                     # bf16

    def _fits(n: int) -> bool:
        rows = n * H
        block = rows * Wp * itemsize
        a_bytes = rows * rows * 2 + a_w_bytes
        temps = rows * Wp * (2 + 4 + 2 + 4)     # bf16 slab, f32 t, bf16 t, f32 y
        return 4 * block + 2 * a_bytes + temps <= int(0.6 * vmem_cap)

    while nbc > m and not _fits(nbc):
        nbc -= m

    # keep the single "parallel" grid axis length >= 2 when there is enough
    # work, so both of v7x's TensorCores get planes and DMA/compute overlap.
    if g >= 2 * m and nbc >= g:
        nbc = max(m, (pl.cdiv(g, 2) // m) * m)

    num_blocks = pl.cdiv(g, nbc)
    g_pad = num_blocks * nbc
    bc_pad = g_pad * p
    R = nbc * H

    # ---- pack (bc, H, W) -> (g_pad*H, Wp): planes along lanes & sublanes ----
    x3 = x.reshape(bc, H, W)
    if bc_pad != bc:
        x3 = jnp.pad(x3, ((0, bc_pad - bc), (0, 0), (0, 0)))
    if p > 1:
        x_packed = (x3.reshape(g_pad, p, H, W)
                      .transpose(0, 2, 1, 3)
                      .reshape(g_pad * H, Wp))
    else:
        x_packed = x3.reshape(g_pad * H, W)

    # ---- constant blur matrices (bf16, block-diagonal for the packing) ------
    a_w_big = jnp.asarray(np.kron(np.eye(p, dtype=np.float32), a_w_np),
                          dtype=jnp.bfloat16)                   # (Wp, Wp)
    a_h_big = jnp.asarray(np.kron(np.eye(nbc, dtype=np.float32), a_h_np),
                          dtype=jnp.bfloat16)                   # (R, R)

    # ---- VMEM budget / limit -------------------------------------------------
    block_bytes = R * Wp * itemsize
    a_bytes = R * R * 2 + a_w_bytes
    temps = R * Wp * 12
    needed = 4 * block_bytes + 2 * a_bytes + temps
    vmem_limit = int(max(16 << 20, min(needed + (4 << 20), int(0.9 * vmem_cap))))

    out_packed = pl.pallas_call(
        _blur_kernel,
        out_shape=jax.ShapeDtypeStruct((g_pad * H, Wp), x.dtype),
        grid_spec=pltpu.PrefetchScalarGridSpec(
            num_scalar_prefetch=0,
            grid=(num_blocks,),
            in_specs=[
                pl.BlockSpec((R, R), lambda i: (0, 0)),      # A_h block-diag (resident)
                pl.BlockSpec((Wp, Wp), lambda i: (0, 0)),    # A_w block-diag (resident)
                pl.BlockSpec((R, Wp), lambda i: (i, 0)),     # input slab
            ],
            out_specs=pl.BlockSpec((R, Wp), lambda i: (i, 0)),
        ),
        compiler_params=pltpu.CompilerParams(
            dimension_semantics=("parallel",),
            vmem_limit_bytes=vmem_limit,
        ),
    )(a_h_big, a_w_big, x_packed)

    # ---- unpack ----------------------------------------------------------------
    if p > 1:
        out3 = (out_packed.reshape(g_pad, H, p, W)
                          .transpose(0, 2, 1, 3)
                          .reshape(bc_pad, H, W))
    else:
        out3 = out_packed.reshape(bc_pad, H, W)
    return out3[:bc].reshape(B, C, H, W)


# ----------------------------------------------------------------------------
# Reference + test
# ----------------------------------------------------------------------------
def _reference_numpy(x, kernel_size: int, sigma: float) -> np.ndarray:
    """float64 numpy reference mirroring F.pad(reflect) + F.conv2d(groups=C)."""
    xn = np.asarray(x, dtype=np.float64)
    pad = (kernel_size - 1) // 2
    xp = np.pad(xn, ((0, 0), (0, 0), (pad, pad), (pad, pad)), mode="reflect")
    ax = np.arange(kernel_size, dtype=np.float64)
    mean = (kernel_size - 1) / 2.0
    g = (1.0 / (sigma * math.sqrt(2.0 * math.pi))) * np.exp(
        -(((ax - mean) / (2.0 * sigma)) ** 2)
    )
    k2 = np.outer(g, g)
    k2 = k2 / k2.sum()
    B, C, H, W = xn.shape
    out = np.zeros((B, C, H, W), np.float64)
    for i in range(kernel_size):
        for j in range(kernel_size):
            out += k2[i, j] * xp[:, :, i:i + H, j:j + W]
    return out


if __name__ == "__main__":
    key = jax.random.PRNGKey(0)
    B, C, H, W = 2, 4, 16, 16
    kernel_size, sigma = 5, 1.0

    x = jax.random.normal(key, (B, C, H, W), dtype=jnp.float32)

    y = gaussian_smoothing(x, channels=C, kernel_size=kernel_size, sigma=sigma)
    y = jax.block_until_ready(y)

    y_ref = _reference_numpy(np.asarray(x), kernel_size, sigma)
    assert y.shape == (B, C, H, W)
    # bf16 MXU operands with f32 accumulation -> looser tolerance vs float64 ref.
    assert np.allclose(np.asarray(y, dtype=np.float64), y_ref,
                       rtol=3e-2, atol=3e-2), "mismatch vs reference"

    print("KERNEL_OK")
</pallas_src>

<mosaic_0001>
module attributes {stable_mosaic.version = 11 : i64} {
  func.func @_blur_kernel(%arg0: i32, %arg1: memref<16x16xbf16, #tpu.memory_space<vmem>>, %arg2: memref<128x128xbf16, #tpu.memory_space<vmem>>, %arg3: memref<16x128xf32, #tpu.memory_space<vmem>>, %arg4: memref<16x128xf32, #tpu.memory_space<vmem>>) attributes {dimension_semantics = [#tpu.dimension_semantics<parallel>], iteration_bounds = array<i64: 1>, scalar_prefetch = 0 : i64, scratch_operands = 0 : i64, tpu.core_type = #tpu.core_type<tc>, window_params = [{pipeline_mode = #tpu.pipeline_mode<synchronous>, transform_indices = @transform_0, window_bounds = array<i64: 16, 16>}, {pipeline_mode = #tpu.pipeline_mode<synchronous>, transform_indices = @transform_1, window_bounds = array<i64: 128, 128>}, {transform_indices = @transform_2, window_bounds = array<i64: 16, 128>}, {transform_indices = @transform_3, window_bounds = array<i64: 16, 128>}]} {
    %c0 = arith.constant 0 : index
    %c0_0 = arith.constant 0 : index
    %0 = vector.load %arg3[%c0, %c0_0] : memref<16x128xf32, #tpu.memory_space<vmem>>, vector<16x128xf32>
    %1 = arith.truncf %0 : vector<16x128xf32> to vector<16x128xbf16>
    %c0_1 = arith.constant 0 : index
    %c0_2 = arith.constant 0 : index
    %2 = vector.load %arg2[%c0_1, %c0_2] : memref<128x128xbf16, #tpu.memory_space<vmem>>, vector<128x128xbf16>
    %cst = arith.constant dense<0.000000e+00> : vector<16x128xf32>
    %3 = tpu.matmul %1, %2, %cst {dimension_numbers = #tpu.dot_dimension_numbers<[1], [0], [0], [1], [0, 0, 1, 1], [], []>} : vector<16x128xbf16>, vector<128x128xbf16>, vector<16x128xf32> -> vector<16x128xf32>
    %c0_3 = arith.constant 0 : index
    %c0_4 = arith.constant 0 : index
    %4 = vector.load %arg1[%c0_3, %c0_4] : memref<16x16xbf16, #tpu.memory_space<vmem>>, vector<16x16xbf16>
    %5 = arith.truncf %3 : vector<16x128xf32> to vector<16x128xbf16>
    %cst_5 = arith.constant dense<0.000000e+00> : vector<16x128xf32>
    %6 = tpu.matmul %4, %5, %cst_5 {dimension_numbers = #tpu.dot_dimension_numbers<[1], [0], [0], [1], [0, 0, 1, 1], [], []>} : vector<16x16xbf16>, vector<16x128xbf16>, vector<16x128xf32> -> vector<16x128xf32>
    %c0_6 = arith.constant 0 : index
    %c0_7 = arith.constant 0 : index
    %7 = vector.load %arg4[%c0_6, %c0_7] : memref<16x128xf32, #tpu.memory_space<vmem>>, vector<16x128xf32>
    tpu.vector_store %arg4[%c0_6, %c0_7], %6 {strides = array<i32>} : memref<16x128xf32, #tpu.memory_space<vmem>>, vector<16x128xf32>,
    return
  }
  func.func @transform_0(%arg0: i32) -> (i32, i32) {
    %c0_i32 = arith.constant 0 : i32
    %c0_i32_0 = arith.constant 0 : i32
    %c0_i32_1 = arith.constant 0 : i32
    return %c0_i32, %c0_i32_0 : i32, i32
  }
  func.func @transform_1(%arg0: i32) -> (i32, i32) {
    %c0_i32 = arith.constant 0 : i32
    %c0_i32_0 = arith.constant 0 : i32
    %c0_i32_1 = arith.constant 0 : i32
    return %c0_i32, %c0_i32_0 : i32, i32
  }
  func.func @transform_2(%arg0: i32) -> (i32, i32) {
    %c0_i32 = arith.constant 0 : i32
    %c0_i32_0 = arith.constant 0 : i32
    return %arg0, %c0_i32 : i32, i32
  }
  func.func @transform_3(%arg0: i32) -> (i32, i32) {
    %c0_i32 = arith.constant 0 : i32
    %c0_i32_0 = arith.constant 0 : i32
    return %arg0, %c0_i32 : i32, i32
  }
}

</mosaic_0001>

<bundles_post_ra>
// kernel: tpu_custom_call.1
= control target key start
LH: loop header
LB: loop body
LE: loop exit
PB: predicated region body
PF: predicated region fallthrough
CT: control target
= control target key end

     0   :  { %8 = vsyncpa [#allocation3], 0  ;;  %s394_s0 = inlined_call_operand.hbm [shape: bf16[16,16], index: 0, kind: input, shape index: {}]   ;;  %s395_s1 = inlined_call_operand.hbm [shape: bf16[128,128], index: 1, kind: input, shape index: {}]   ;;  %s396_s2 = inlined_call_operand.hbm [shape: f32[16,128], index: 2, kind: input, shape index: {}]   ;;  %s397_s3 = inlined_call_operand.hbm [shape: f32[16,128], index: 3, kind: output, shape index: {}]  }
   0x1   :  { %9 = vsyncpa [#allocation6], 0 }
   0x2   :  { %10 = vsyncpa [#allocation4], 0  ;;  %s28_s14 = sshll.u32 %s395_s1, 4  ;;  %s348_s15 = smov [#allocation5]   ;;  %s29_s14 = int_to_ptr.hbm [resolvable:$true] %s28_s14 }
   0x3   :  { %s30_s16 = sshll.u32 %s348_s15, 4  ;;  %s15_s19 = sshll.u32 %s394_s0, 4  ;;  %s31_s16 = int_to_ptr.vmem [resolvable:$true] %s30_s16  ;;  %s16_s19 = int_to_ptr.hbm [resolvable:$true] %s15_s19 }
   0x4   :  { %s349_s20 = smov 64   ;;  %s350_s21 = smov 4  }
   0x5   :  { %36 = dma.hbm_to_vmem [thread:$0]  %s29_s14, 1024, %s31_s16, [#allocation6], %s349_s20, %s349_s20, %s350_s21  }
   0x6   :  { %s351_s22 = smov [#allocation2]   ;;  %s41_s26 = sshll.u32 %s396_s2, 4  ;;  %s42_s26 = int_to_ptr.hbm [resolvable:$true] %s41_s26 }
   0x7   :  { %s17_s23 = sshll.u32 %s351_s22, 4  ;;  %s352_s1 = smov [#allocation7]   ;;  %s18_s23 = int_to_ptr.vmem [resolvable:$true] %s17_s23 }
   0x8   :  { %23 = dma.hbm_to_vmem [thread:$0]  %s16_s19, 128, %s18_s23, [#allocation3], %s349_s20, %s349_s20, %s350_s21  }
   0x9   :  { %s43_s27 = sshll.u32 %s352_s1, 4  ;;  %s353_s28 = smov 128   ;;  %s44_s27 = int_to_ptr.vmem [resolvable:$true] %s43_s27 }
   0xa   :  { %s354_s29 = smov 8  }
   0xb   :  { %49 = dma.hbm_to_vmem [thread:$0]  %s42_s26, 256, %s44_s27, [#allocation6], %s353_s28, %s353_s28, %s354_s29  }
   0xc   :  { %342 = dma.done.wait [#allocation3], 128  }
   0xd   :  { %343 = vsyncadd [#allocation3], 4294967168 }
   0xe   :  { %344 = dma.done.wait [#allocation6], 1280  }
   0xf   :  { %345 = vsyncadd [#allocation6], 4294966016  ;;  %v236_v0 = vld [vmem:[#allocation5 + $0x38] sm:$0xff]  ;;  %v235_v1 = vld [vmem:[#allocation5 + $0x30] sm:$0xff]  ;;  %vm152_vm0 = vcmask 130048   ;;  %s355_s0 = smov [#allocation8]  }
  0x10   :  { %130 = vmatpush.bf16.msra.mxu0 %v236_v0  ;;  %v234_v2 = vld [vmem:[#allocation5 + $0x28] sm:$0xff]  ;;  %v233_v3 = vld [vmem:[#allocation5 + $0x20] sm:$0xff]  ;;  %v232_v4 = vld [vmem:[#allocation5 + $0x18] sm:$0xff]  ;;  %s176_s2 = sshll.u32 %s355_s0, 4  ;;  %s178_s5 = sshll.u32 %s397_s3, 4  ;;  %s177_s2 = int_to_ptr.vmem [resolvable:$true] %s176_s2  ;;  %s179_s5 = int_to_ptr.hbm [resolvable:$true] %s178_s5 }
  0x11   :  { %v231_v5 = vld [vmem:[#allocation5 + $0x10] sm:$0xff]  ;;  %v230_v6 = vld [vmem:[#allocation5 + $0x8] sm:$0xff]  ;;  %v229_v7 = vld [vmem:[#allocation5] sm:$0xff] }
  0x12   :  { %v63_v8 = vld [vmem:[#allocation7] sm:$0xff]  ;;  %v64_v9 = vld [vmem:[#allocation7 + $0x8] sm:$0xff]  ;;  %v237_v14 = vld [vmem:[#allocation2] sm:$0xff] }
  0x13   :  { %v65_v10 = vpack.c.bf16 %v64_v9, %v63_v8 }
  0x14   :  { %131 = vmatpush.bf16.msra.mxu0 %v235_v1 }
  0x18   :  { %132 = vmatpush.bf16.msra.mxu0 %v234_v2 }
  0x1c   :  { %133 = vmatpush.bf16.msra.mxu0 %v233_v3 }
  0x20   :  { %134 = vmatpush.bf16.msra.mxu0 %v232_v4 }
  0x24   :  { %135 = vmatpush.bf16.msra.mxu0 %v231_v5 }
  0x28   :  { %136 = vmatpush.bf16.msra.mxu0 %v230_v6 }
  0x2c   :  { %137 = vmatpush.bf16.msra.mxu0 %v229_v7 }
  0x2f   :  { %138 = vmatmul.bf16.vlgmr.msra.gmra.mxu0 %v65_v10 }
  0xac   :  { %v139_v11 = vpop.f32.mrf.mxu0 }
  0xb4   :  { %v141_v12 = vpop.f32.mrf.mxu0 }
  0xb5   :  { %v146_v13 = vpack.c.bf16 %v141_v12, %v139_v11 }
  0xb7   :  { %163 = vmatpush.bf16.msra.mxu1 %v146_v13 }
  0xba   :  { %228 = vmatmul.msk.bf16.vlgmr.msra.gmra.mxu1 %vm152_vm0, %v237_v14 }
 0x137   :  { %v165_v15 = vpop.f32.mrf.mxu1 }
 0x138   :  { %170 = vst [vmem:[#allocation8] sm:$0xff] %v165_v15 }
 0x13f   :  { %v167_v16 = vpop.f32.mrf.mxu1 }
 0x140   :  { %171 = vst [vmem:[#allocation8 + $0x8] sm:$0xff] %v167_v16 }
 0x141   :  { %184 = dma.vmem_to_hbm [thread:$0]  %s177_s2, 256, %s179_s5, [#allocation4], %s353_s28, %s353_s28, %s354_s29  }
 0x142   :  { %346 = dma.done.wait [#allocation4], 256  }
 0x143   :  { %347 = vsyncadd [#allocation4], 4294967040 }
 0x144   :  { %189 = vsyncpa [#allocation3], 1 }
 0x145   :  { %190 = vsyncpa [#allocation6], 1 }
 0x146   :  { %191 = vsyncpa [#allocation4], 1 }

</bundles_post_ra>
